<compile_context>
chip_gen: v6e
topology: v6e:2x2x1
jax: 0.10.0
libtpu: 0.0.40
codegen_flags: <defaults>
</compile_context>

<pallas_src>
import jax
import jax.numpy as jnp
from jax.experimental import pallas as pl
from jax.experimental.pallas import tpu as pltpu


def _round_up(n: int, m: int) -> int:
    return ((n + m - 1) // m) * m


def _double_q_kernel(a_ref, s_ref, w1a_ref, w1s_ref, w2_ref, w3_ref,
                     b1_ref, b2_ref, b3_ref, out_ref):
    """Fused DoubleQ forward, feature-major: batch lives on the lane axis.

      a_ref   (A, TB)    action tile (transposed)
      s_ref   (S, TB)    state tile  (transposed)
      w1a_ref (2H, A)    W1 rows for action, fused over both heads, transposed
      w1s_ref (2H, S)    W1 rows for state,  fused over both heads, transposed
      w2_ref  (2H, 2H)   block_diag(W2_q1, W2_q2)^T
      w3_ref  (8, 2H)    row0 = W3_q1^T, row1 = W3_q2^T (padded to 8 sublanes)
      b1_ref  (2H, 1)    b2_ref (2H, 1)    b3_ref (8, 1)
      out_ref (1, TB)    min(q1, q2) over the batch tile (lane-dense)
    """
    # h1 = ReLU(W1^T @ [action|state]^T + b1)  -- no concat: two partial matmuls
    h = jnp.dot(w1a_ref[...], a_ref[...], preferred_element_type=jnp.float32)
    h = h + jnp.dot(w1s_ref[...], s_ref[...], preferred_element_type=jnp.float32)
    h = jnp.maximum(h + b1_ref[...], 0.0)                       # (2H, TB)

    # h2 = ReLU(block_diag(W2a, W2b)^T @ h1 + b2)  -- both heads at once
    h = jnp.maximum(
        jnp.dot(w2_ref[...], h, preferred_element_type=jnp.float32) + b2_ref[...],
        0.0)                                                     # (2H, TB)

    # q: row 0 = q1, row 1 = q2 (rows 2..7 are padding)
    q = jnp.dot(w3_ref[...], h, preferred_element_type=jnp.float32) + b3_ref[...]
    out_ref[...] = jnp.minimum(q[0:1, :], q[1:2, :])             # (1, TB) DoubleQ min


def pack_params(params, action_dim: int, state_dim: int, hidden: int):
    """Fuse the two Q-heads and pre-transpose all weights.  Call ONCE at init."""
    H, H2 = hidden, 2 * hidden
    p1, p2 = params["q1"], params["q2"]
    f32 = lambda x: jnp.asarray(x, jnp.float32)

    w1 = jnp.concatenate([f32(p1["w1"]), f32(p2["w1"])], axis=1)       # (A+S, 2H)
    w1a_t = w1[:action_dim].T                                          # (2H, A)
    w1s_t = w1[action_dim:].T                                          # (2H, S)
    b1 = jnp.concatenate([f32(p1["b1"]), f32(p2["b1"])], axis=1).reshape(H2, 1)

    zH = jnp.zeros((H, H), jnp.float32)
    w2_t = jnp.block([[f32(p1["w2"]), zH], [zH, f32(p2["w2"])]]).T     # (2H, 2H)
    b2 = jnp.concatenate([f32(p1["b2"]), f32(p2["b2"])], axis=1).reshape(H2, 1)

    w3_t = jnp.zeros((8, H2), jnp.float32)                             # 8 sublanes
    w3_t = w3_t.at[0, :H].set(f32(p1["w3"]).reshape(-1))
    w3_t = w3_t.at[1, H:].set(f32(p2["w3"]).reshape(-1))
    b3 = jnp.zeros((8, 1), jnp.float32)
    b3 = b3.at[0, 0].set(f32(p1["b3"]).reshape(-1)[0])                 # works for (1,1) or (1,)
    b3 = b3.at[1, 0].set(f32(p2["b3"]).reshape(-1)[0])

    return {"w1a_t": w1a_t, "w1s_t": w1s_t, "w2_t": w2_t, "w3_t": w3_t,
            "b1": b1, "b2": b2, "b3": b3}


def _choose_tile(b_pad: int) -> int:
    """Batch tile: multiple of 128, up to 1024, with >=2 grid steps when possible
    (so v7x's two TensorCores both get work via the 'parallel' grid axis)."""
    if b_pad <= 128:
        return 128
    for t in (1024, 512, 256, 128):
        if b_pad % t == 0 and b_pad // t >= 2:
            return t
    return 128


def idql_critic_forward(action, state, packed):
    """IDQLCritic.forward: min of the two Q-MLPs, fused into one Pallas kernel."""
    action = action.astype(jnp.float32)
    state = state.astype(jnp.float32)
    B, A = action.shape
    S = state.shape[-1]
    H2 = packed["w2_t"].shape[0]

    B_pad = _round_up(max(B, 1), 128)
    TB = _choose_tile(B_pad)
    grid = B_pad // TB

    # Feature-major inputs: pad the batch then put it on the lane axis.
    a_t = jnp.pad(action, ((0, B_pad - B), (0, 0))).T       # (A, B_pad)
    s_t = jnp.pad(state, ((0, B_pad - B), (0, 0))).T        # (S, B_pad)

    const = lambda i: (0, 0)   # weights: fetched once, VMEM resident across the grid
    out = pl.pallas_call(
        _double_q_kernel,
        out_shape=jax.ShapeDtypeStruct((1, B_pad), jnp.float32),
        grid=(grid,),
        in_specs=[
            pl.BlockSpec((A, TB), lambda i: (0, i)),         # action tile (lane-dense)
            pl.BlockSpec((S, TB), lambda i: (0, i)),         # state tile  (lane-dense)
            pl.BlockSpec((H2, A), const),
            pl.BlockSpec((H2, S), const),
            pl.BlockSpec((H2, H2), const),
            pl.BlockSpec((8, H2), const),
            pl.BlockSpec((H2, 1), const),
            pl.BlockSpec((H2, 1), const),
            pl.BlockSpec((8, 1), const),
        ],
        out_specs=pl.BlockSpec((1, TB), lambda i: (0, i)),   # lane-dense output
        compiler_params=pltpu.CompilerParams(
            dimension_semantics=("parallel",),
        ),
    )(a_t, s_t, packed["w1a_t"], packed["w1s_t"], packed["w2_t"],
      packed["w3_t"], packed["b1"], packed["b2"], packed["b3"])

    # (1, B_pad) row-major == (B_pad, 1) row-major: reshape + slice are free.
    return out.reshape(B_pad, 1)[:B]


def make_params(key, in_dim, hidden):
    """Deterministic synthetic parameters for the two Q-MLPs."""
    def mlp_params(k):
        k1, k2, k3 = jax.random.split(k, 3)
        return {
            "w1": jax.random.normal(k1, (in_dim, hidden), jnp.float32) * 0.1,
            "b1": jnp.zeros((1, hidden), jnp.float32),
            "w2": jax.random.normal(k2, (hidden, hidden), jnp.float32) * 0.1,
            "b2": jnp.zeros((1, hidden), jnp.float32),
            "w3": jax.random.normal(k3, (hidden, 1), jnp.float32) * 0.1,
            "b3": jnp.zeros((1, 1), jnp.float32),
        }

    ka, kb = jax.random.split(key)
    return {"q1": mlp_params(ka), "q2": mlp_params(kb)}


def reference_forward(action, state, params):
    """Pure-JAX reference of the same forward for a sanity check."""
    x = jnp.concatenate([action, state], axis=-1).astype(jnp.float32)

    def mlp(p):
        h = jnp.maximum(x @ p["w1"] + p["b1"], 0.0)
        h = jnp.maximum(h @ p["w2"] + p["b2"], 0.0)
        return h @ p["w3"] + p["b3"]

    return jnp.minimum(mlp(params["q1"]), mlp(params["q2"]))


if __name__ == "__main__":
    key = jax.random.PRNGKey(0)
    k_act, k_state, k_param = jax.random.split(key, 3)

    batch, action_dim, state_dim, hidden = 8, 8, 24, 64
    action = jax.random.normal(k_act, (batch, action_dim), jnp.float32)
    state = jax.random.normal(k_state, (batch, state_dim), jnp.float32)

    params = make_params(k_param, action_dim + state_dim, hidden)

    # Parameter packing done ONCE at init (hoisted out of the forward path).
    packed = jax.tree_util.tree_map(jax.block_until_ready,
                                    pack_params(params, action_dim, state_dim, hidden))

    fwd = jax.jit(idql_critic_forward)
    out = fwd(action, state, packed)
    out = jax.block_until_ready(out)

    ref = reference_forward(action, state, params)
    assert out.shape == (batch, 1)
    assert jnp.allclose(out, ref, atol=1e-4, rtol=1e-4), float(
        jnp.max(jnp.abs(out - ref)))

    # TODO(synk): v_loss / iql_q_loss are training-time losses (use q_target, VNetwork);
    # only the module's forward (DoubleQNetwork min-Q) is implemented as the kernel.
    print("KERNEL_OK")
</pallas_src>

<mosaic_0001>
module attributes {stable_mosaic.version = 11 : i64} {
  func.func @_double_q_kernel(%arg0: i32, %arg1: memref<8x128xf32, #tpu.memory_space<vmem>>, %arg2: memref<24x128xf32, #tpu.memory_space<vmem>>, %arg3: memref<128x8xf32, #tpu.memory_space<vmem>>, %arg4: memref<128x24xf32, #tpu.memory_space<vmem>>, %arg5: memref<128x128xf32, #tpu.memory_space<vmem>>, %arg6: memref<8x128xf32, #tpu.memory_space<vmem>>, %arg7: memref<128x1xf32, #tpu.memory_space<vmem>>, %arg8: memref<128x1xf32, #tpu.memory_space<vmem>>, %arg9: memref<8x1xf32, #tpu.memory_space<vmem>>, %arg10: memref<1x128xf32, #tpu.memory_space<vmem>>) attributes {dimension_semantics = [#tpu.dimension_semantics<parallel>], iteration_bounds = array<i64: 1>, scalar_prefetch = 0 : i64, scratch_operands = 0 : i64, tpu.core_type = #tpu.core_type<tc>, window_params = [{transform_indices = @transform_0, window_bounds = array<i64: 8, 128>}, {transform_indices = @transform_1, window_bounds = array<i64: 24, 128>}, {pipeline_mode = #tpu.pipeline_mode<synchronous>, transform_indices = @transform_2, window_bounds = array<i64: 128, 8>}, {pipeline_mode = #tpu.pipeline_mode<synchronous>, transform_indices = @transform_3, window_bounds = array<i64: 128, 24>}, {pipeline_mode = #tpu.pipeline_mode<synchronous>, transform_indices = @transform_4, window_bounds = array<i64: 128, 128>}, {pipeline_mode = #tpu.pipeline_mode<synchronous>, transform_indices = @transform_5, window_bounds = array<i64: 8, 128>}, {pipeline_mode = #tpu.pipeline_mode<synchronous>, transform_indices = @transform_6, window_bounds = array<i64: 128, 1>}, {pipeline_mode = #tpu.pipeline_mode<synchronous>, transform_indices = @transform_7, window_bounds = array<i64: 128, 1>}, {pipeline_mode = #tpu.pipeline_mode<synchronous>, transform_indices = @transform_8, window_bounds = array<i64: 8, 1>}, {transform_indices = @transform_9, window_bounds = array<i64: 1, 128>}]} {
    %c0 = arith.constant 0 : index
    %c0_0 = arith.constant 0 : index
    %0 = vector.load %arg3[%c0, %c0_0] : memref<128x8xf32, #tpu.memory_space<vmem>>, vector<128x8xf32>
    %c0_1 = arith.constant 0 : index
    %c0_2 = arith.constant 0 : index
    %1 = vector.load %arg1[%c0_1, %c0_2] : memref<8x128xf32, #tpu.memory_space<vmem>>, vector<8x128xf32>
    %cst = arith.constant dense<0.000000e+00> : vector<128x128xf32>
    %2 = tpu.matmul %0, %1, %cst {dimension_numbers = #tpu.dot_dimension_numbers<[1], [0], [0], [1], [0, 0, 1, 1], [], []>} : vector<128x8xf32>, vector<8x128xf32>, vector<128x128xf32> -> vector<128x128xf32>
    %c0_3 = arith.constant 0 : index
    %c0_4 = arith.constant 0 : index
    %3 = vector.load %arg4[%c0_3, %c0_4] : memref<128x24xf32, #tpu.memory_space<vmem>>, vector<128x24xf32>
    %c0_5 = arith.constant 0 : index
    %c0_6 = arith.constant 0 : index
    %4 = vector.load %arg2[%c0_5, %c0_6] : memref<24x128xf32, #tpu.memory_space<vmem>>, vector<24x128xf32>
    %cst_7 = arith.constant dense<0.000000e+00> : vector<128x128xf32>
    %5 = tpu.matmul %3, %4, %cst_7 {dimension_numbers = #tpu.dot_dimension_numbers<[1], [0], [0], [1], [0, 0, 1, 1], [], []>} : vector<128x24xf32>, vector<24x128xf32>, vector<128x128xf32> -> vector<128x128xf32>
    %6 = arith.addf %2, %5 : vector<128x128xf32>
    %c0_8 = arith.constant 0 : index
    %c0_9 = arith.constant 0 : index
    %7 = vector.load %arg7[%c0_8, %c0_9] : memref<128x1xf32, #tpu.memory_space<vmem>>, vector<128x1xf32>
    %8 = vector.broadcast %7 : vector<128x1xf32> to vector<128x128xf32>
    %9 = arith.addf %6, %8 : vector<128x128xf32>
    %cst_10 = arith.constant 0.000000e+00 : f32
    %10 = vector.broadcast %cst_10 : f32 to vector<128x128xf32>
    %11 = arith.maximumf %9, %10 : vector<128x128xf32>
    %c0_11 = arith.constant 0 : index
    %c0_12 = arith.constant 0 : index
    %12 = vector.load %arg5[%c0_11, %c0_12] : memref<128x128xf32, #tpu.memory_space<vmem>>, vector<128x128xf32>
    %cst_13 = arith.constant dense<0.000000e+00> : vector<128x128xf32>
    %13 = tpu.matmul %12, %11, %cst_13 {dimension_numbers = #tpu.dot_dimension_numbers<[1], [0], [0], [1], [0, 0, 1, 1], [], []>} : vector<128x128xf32>, vector<128x128xf32>, vector<128x128xf32> -> vector<128x128xf32>
    %c0_14 = arith.constant 0 : index
    %c0_15 = arith.constant 0 : index
    %14 = vector.load %arg8[%c0_14, %c0_15] : memref<128x1xf32, #tpu.memory_space<vmem>>, vector<128x1xf32>
    %15 = vector.broadcast %14 : vector<128x1xf32> to vector<128x128xf32>
    %16 = arith.addf %13, %15 : vector<128x128xf32>
    %cst_16 = arith.constant 0.000000e+00 : f32
    %17 = vector.broadcast %cst_16 : f32 to vector<128x128xf32>
    %18 = arith.maximumf %16, %17 : vector<128x128xf32>
    %c0_17 = arith.constant 0 : index
    %c0_18 = arith.constant 0 : index
    %19 = vector.load %arg6[%c0_17, %c0_18] : memref<8x128xf32, #tpu.memory_space<vmem>>, vector<8x128xf32>
    %cst_19 = arith.constant dense<0.000000e+00> : vector<8x128xf32>
    %20 = tpu.matmul %19, %18, %cst_19 {dimension_numbers = #tpu.dot_dimension_numbers<[1], [0], [0], [1], [0, 0, 1, 1], [], []>} : vector<8x128xf32>, vector<128x128xf32>, vector<8x128xf32> -> vector<8x128xf32>
    %c0_20 = arith.constant 0 : index
    %c0_21 = arith.constant 0 : index
    %21 = vector.load %arg9[%c0_20, %c0_21] : memref<8x1xf32, #tpu.memory_space<vmem>>, vector<8x1xf32>
    %22 = vector.broadcast %21 : vector<8x1xf32> to vector<8x128xf32>
    %23 = arith.addf %20, %22 : vector<8x128xf32>
    %24 = vector.extract_strided_slice %23 {offsets = [0, 0], sizes = [1, 128], strides = [1, 1]} : vector<8x128xf32> to vector<1x128xf32>
    %25 = vector.extract_strided_slice %23 {offsets = [1, 0], sizes = [1, 128], strides = [1, 1]} : vector<8x128xf32> to vector<1x128xf32>
    %26 = arith.minimumf %24, %25 : vector<1x128xf32>
    %c0_22 = arith.constant 0 : index
    %c0_23 = arith.constant 0 : index
    %27 = vector.load %arg10[%c0_22, %c0_23] : memref<1x128xf32, #tpu.memory_space<vmem>>, vector<1x128xf32>
    tpu.vector_store %arg10[%c0_22, %c0_23], %26 {strides = array<i32>} : memref<1x128xf32, #tpu.memory_space<vmem>>, vector<1x128xf32>,
    return
  }
  func.func @transform_0(%arg0: i32) -> (i32, i32) {
    %c0_i32 = arith.constant 0 : i32
    %c0_i32_0 = arith.constant 0 : i32
    return %c0_i32, %arg0 : i32, i32
  }
  func.func @transform_1(%arg0: i32) -> (i32, i32) {
    %c0_i32 = arith.constant 0 : i32
    %c0_i32_0 = arith.constant 0 : i32
    return %c0_i32, %arg0 : i32, i32
  }
  func.func @transform_2(%arg0: i32) -> (i32, i32) {
    %c0_i32 = arith.constant 0 : i32
    %c0_i32_0 = arith.constant 0 : i32
    %c0_i32_1 = arith.constant 0 : i32
    return %c0_i32, %c0_i32_0 : i32, i32
  }
  func.func @transform_3(%arg0: i32) -> (i32, i32) {
    %c0_i32 = arith.constant 0 : i32
    %c0_i32_0 = arith.constant 0 : i32
    %c0_i32_1 = arith.constant 0 : i32
    return %c0_i32, %c0_i32_0 : i32, i32
  }
  func.func @transform_4(%arg0: i32) -> (i32, i32) {
    %c0_i32 = arith.constant 0 : i32
    %c0_i32_0 = arith.constant 0 : i32
    %c0_i32_1 = arith.constant 0 : i32
    return %c0_i32, %c0_i32_0 : i32, i32
  }
  func.func @transform_5(%arg0: i32) -> (i32, i32) {
    %c0_i32 = arith.constant 0 : i32
    %c0_i32_0 = arith.constant 0 : i32
    %c0_i32_1 = arith.constant 0 : i32
    return %c0_i32, %c0_i32_0 : i32, i32
  }
  func.func @transform_6(%arg0: i32) -> (i32, i32) {
    %c0_i32 = arith.constant 0 : i32
    %c0_i32_0 = arith.constant 0 : i32
    %c0_i32_1 = arith.constant 0 : i32
    return %c0_i32, %c0_i32_0 : i32, i32
  }
  func.func @transform_7(%arg0: i32) -> (i32, i32) {
    %c0_i32 = arith.constant 0 : i32
    %c0_i32_0 = arith.constant 0 : i32
    %c0_i32_1 = arith.constant 0 : i32
    return %c0_i32, %c0_i32_0 : i32, i32
  }
  func.func @transform_8(%arg0: i32) -> (i32, i32) {
    %c0_i32 = arith.constant 0 : i32
    %c0_i32_0 = arith.constant 0 : i32
    %c0_i32_1 = arith.constant 0 : i32
    return %c0_i32, %c0_i32_0 : i32, i32
  }
  func.func @transform_9(%arg0: i32) -> (i32, i32) {
    %c0_i32 = arith.constant 0 : i32
    %c0_i32_0 = arith.constant 0 : i32
    return %c0_i32, %arg0 : i32, i32
  }
}

</mosaic_0001>

<bundles_post_ra>
// kernel: idql_critic_forward.1
= control target key start
LH: loop header
LB: loop body
LE: loop exit
PB: predicated region body
PF: predicated region fallthrough
CT: control target
= control target key end

     0   :  { %vm262_vm0 = vcmask 64512   ;;  %v1212_v3 = vmov 0   ;;  %vm68_vm1 = vcmask 195584   ;;  %vm1214_vm2 = vmmov 0   ;;  %s1623_s1 = inlined_call_operand.vmem [shape: f32[24,128], index: 1, kind: input, shape index: {}]   ;;  %s1624_s0 = inlined_call_operand.vmem [shape: f32[8,128], index: 0, kind: input, shape index: {}]   ;;  %s1625_s2 = inlined_call_operand.vmem [shape: f32[128,8], index: 2, kind: input, shape index: {}]   ;;  %s1626_s3 = inlined_call_operand.vmem [shape: f32[128,24], index: 3, kind: input, shape index: {}]   ;;  %s1627_s6 = inlined_call_operand.vmem [shape: f32[128,1], index: 6, kind: input, shape index: {}]   ;;  %s1628_s7 = inlined_call_operand.vmem [shape: f32[128,1], index: 7, kind: input, shape index: {}]   ;;  %s1629_s8 = inlined_call_operand.vmem [shape: f32[8,1], index: 8, kind: input, shape index: {}]   ;;  %s1630_s4 = inlined_call_operand.vmem [shape: f32[128,128], index: 4, kind: input, shape index: {}]   ;;  %s1631_s5 = inlined_call_operand.vmem [shape: f32[8,128], index: 5, kind: input, shape index: {}]   ;;  %s1632_s9 = inlined_call_operand.vmem [shape: f32[1,128], index: 9, kind: output, shape index: {}]  }
   0x1   :  { %v67_v0 = vld [vmem:[%s1623_s1 + $0x10] sm:$0xff]  ;;  %v66_v1 = vld [vmem:[%s1623_s1 + $0x8] sm:$0xff]  ;;  %v48_v2 = vld [vmem:[%s1624_s0] sm:$0xff]  ;;  %1210 = vset.pattern.permute.xlu0 %v1212_v3  ;;  %1211 = vset.pattern.permute.xlu1 %v1212_v3 }
   0x2   :  { %1060 = vmatprep.subr.mxu0 %v67_v0  ;;  %1090 = vmatprep.subr.mxu1 %v48_v2  ;;  %v32_v4 = vld [vmem:[%s1625_s2] sm:$0xff]  ;;  %v33_v5 = vld [vmem:[%s1625_s2 + $0x8] sm:$0xff]  ;;  %v34_v8 = vld [vmem:[%s1625_s2 + $0x10] sm:$0xff] }
   0x3   :  { %1061 = vmatpush3.msra.mxu0 %v67_v0  ;;  %1091 = vmatpush3.msra.mxu1 %v48_v2  ;;  %v65_v6 = vld [vmem:[%s1623_s1] sm:$0xff]  ;;  %v50_v9 = vld [vmem:[%s1626_s3 + $0x8] sm:$0xff]  ;;  %v35_v10 = vld [vmem:[%s1625_s2 + $0x18] sm:$0xff] }
   0x4   :  { %v49_v7 = vld [vmem:[%s1626_s3] sm:$0xff]  ;;  %1062 = vmatprep.subr.mxu0 %v66_v1  ;;  %1092 = vmatprep.mubr.msk.f32.mxu1 %vm262_vm0, %v32_v4  ;;  %v51_v11 = vld [vmem:[%s1626_s3 + $0x10] sm:$0xff]  ;;  %v52_v13 = vld [vmem:[%s1626_s3 + $0x18] sm:$0xff] }
   0x5   :  { %1063 = vmatpush3.msra.mxu0 %v66_v1  ;;  %1093 = vmatmul.mubr.msk.f32.vlgmr.msra.gmra.mxu1 %vm262_vm0, %v33_v5  ;;  %v36_v12 = vld [vmem:[%s1625_s2 + $0x20] sm:$0xff]  ;;  %v37_v14 = vld [vmem:[%s1625_s2 + $0x28] sm:$0xff]  ;;  %v38_v16 = vld [vmem:[%s1625_s2 + $0x30] sm:$0xff] }
   0x6   :  { %1064 = vmatprep.subr.mxu0 %v65_v6  ;;  %1066 = vmatprep.mubr.msk.f32.mxu0 %vm68_vm1, %v49_v7  ;;  %v53_v15 = vld [vmem:[%s1626_s3 + $0x20] sm:$0xff]  ;;  %v54_v17 = vld [vmem:[%s1626_s3 + $0x28] sm:$0xff]  ;;  %v471_v18 = vld [vmem:[%s1627_s6 + $0x78] sm:$0xff] }
   0x7   :  { %1065 = vmatpush3.msra.mxu0 %v65_v6  ;;  %1095 = vmatprep.mubr.msk.f32.mxu1 %vm262_vm0, %v34_v8  ;;  %v469_v19 = vld [vmem:[%s1627_s6 + $0x68] sm:$0xff]  ;;  %v39_v20 = vld [vmem:[%s1625_s2 + $0x38] sm:$0xff]  ;;  %v55_v21 = vld [vmem:[%s1626_s3 + $0x30] sm:$0xff] }
   0x8   :  { %1067 = vmatmul.mubr.msk.f32.vlgmr.msra.gmra.mxu0 %vm68_vm1, %v50_v9  ;;  %549 = vperm.xlu0 %1210, %v471_v18   ;;  %v40_v22 = vld [vmem:[%s1625_s2 + $0x40] sm:$0xff]  ;;  %v470_v23 = vld [vmem:[%s1627_s6 + $0x70] sm:$0xff]  ;;  %v56_v25 = vld [vmem:[%s1626_s3 + $0x38] sm:$0xff] }
   0x9   :  { %1096 = vmatmul.mubr.msk.f32.gmra.mxu1 %vm262_vm0, %v35_v10  ;;  %1069 = vmatprep.mubr.msk.f32.mxu0 %vm68_vm1, %v51_v11  ;;  %v468_v24 = vld [vmem:[%s1627_s6 + $0x60] sm:$0xff]  ;;  %v41_v26 = vld [vmem:[%s1625_s2 + $0x48] sm:$0xff]  ;;  %v42_v28 = vld [vmem:[%s1625_s2 + $0x50] sm:$0xff] }
   0xa   :  { %1098 = vmatprep.mubr.msk.f32.mxu1 %vm262_vm0, %v36_v12  ;;  %539 = vperm.xlu1 %1211, %v469_v19   ;;  %v57_v27 = vld [vmem:[%s1626_s3 + $0x40] sm:$0xff]  ;;  %v467_v29 = vld [vmem:[%s1627_s6 + $0x58] sm:$0xff]  ;;  %v466_v30 = vld [vmem:[%s1627_s6 + $0x50] sm:$0xff] }
   0xb   :  { %v58_v31 = vld [vmem:[%s1626_s3 + $0x48] sm:$0xff]  ;;  %v43_v32 = vld [vmem:[%s1625_s2 + $0x58] sm:$0xff]  ;;  %v59_v33 = vld [vmem:[%s1626_s3 + $0x50] sm:$0xff] }
   0xc   :  { %1070 = vmatmul.mubr.msk.f32.gmra.mxu0 %vm68_vm1, %v52_v13  ;;  %544 = vperm.xlu0 %1210, %v470_v23   ;;  %v44_v34 = vld [vmem:[%s1625_s2 + $0x60] sm:$0xff]  ;;  %v465_v35 = vld [vmem:[%s1627_s6 + $0x48] sm:$0xff]  ;;  %v60_v37 = vld [vmem:[%s1626_s3 + $0x58] sm:$0xff] }
   0xd   :  { %1099 = vmatmul.mubr.msk.f32.gmra.mxu1 %vm262_vm0, %v37_v14  ;;  %1072 = vmatprep.mubr.msk.f32.mxu0 %vm68_vm1, %v53_v15  ;;  %v464_v36 = vld [vmem:[%s1627_s6 + $0x40] sm:$0xff]  ;;  %v45_v38 = vld [vmem:[%s1625_s2 + $0x68] sm:$0xff]  ;;  %v46_v40 = vld [vmem:[%s1625_s2 + $0x70] sm:$0xff] }
   0xe   :  { %1101 = vmatprep.mubr.msk.f32.mxu1 %vm262_vm0, %v38_v16  ;;  %534 = vperm.xlu1 %1211, %v468_v24   ;;  %v61_v39 = vld [vmem:[%s1626_s3 + $0x60] sm:$0xff]  ;;  %v463_v41 = vld [vmem:[%s1627_s6 + $0x38] sm:$0xff]  ;;  %v462_v42 = vld [vmem:[%s1627_s6 + $0x30] sm:$0xff] }
   0xf   :  { %v62_v43 = vld [vmem:[%s1626_s3 + $0x68] sm:$0xff]  ;;  %v47_v44 = vld [vmem:[%s1625_s2 + $0x78] sm:$0xff]  ;;  %v63_v45 = vld [vmem:[%s1626_s3 + $0x70] sm:$0xff] }
  0x10   :  { %1073 = vmatmul.mubr.msk.f32.gmra.mxu0 %vm68_vm1, %v54_v17  ;;  %529 = vperm.xlu0 %1210, %v467_v29   ;;  %v461_v46 = vld [vmem:[%s1627_s6 + $0x28] sm:$0xff]  ;;  %v460_v47 = vld [vmem:[%s1627_s6 + $0x20] sm:$0xff]  ;;  %v64_v48 = vld [vmem:[%s1626_s3 + $0x78] sm:$0xff] }
  0x11   :  { %1102 = vmatmul.mubr.msk.f32.gmra.mxu1 %vm262_vm0, %v39_v20  ;;  %1075 = vmatprep.mubr.msk.f32.mxu0 %vm68_vm1, %v55_v21  ;;  %v459_v49 = vld [vmem:[%s1627_s6 + $0x18] sm:$0xff]  ;;  %v458_v50 = vld [vmem:[%s1627_s6 + $0x10] sm:$0xff]  ;;  %v457_v51 = vld [vmem:[%s1627_s6 + $0x8] sm:$0xff] }
  0x12   :  { %1104 = vmatprep.mubr.msk.f32.mxu1 %vm262_vm0, %v40_v22  ;;  %524 = vperm.xlu1 %1211, %v466_v30   ;;  %v456_v52 = vld [vmem:[%s1627_s6] sm:$0xff]  ;;  %v615_v53 = vld [vmem:[%s1628_s7 + $0x78] sm:$0xff]  ;;  %v614_v54 = vld [vmem:[%s1628_s7 + $0x70] sm:$0xff] }
  0x13   :  { %v613_v55 = vld [vmem:[%s1628_s7 + $0x68] sm:$0xff]  ;;  %v612_v56 = vld [vmem:[%s1628_s7 + $0x60] sm:$0xff]  ;;  %v611_v57 = vld [vmem:[%s1628_s7 + $0x58] sm:$0xff] }
  0x14   :  { %1076 = vmatmul.mubr.msk.f32.gmra.mxu0 %vm68_vm1, %v56_v25  ;;  %519 = vperm.xlu0 %1210, %v465_v35   ;;  %v610_v58 = vld [vmem:[%s1628_s7 + $0x50] sm:$0xff]  ;;  %v609_v59 = vld [vmem:[%s1628_s7 + $0x48] sm:$0xff]  ;;  %v608_v60 = vld [vmem:[%s1628_s7 + $0x40] sm:$0xff] }
  0x15   :  { %1105 = vmatmul.mubr.msk.f32.gmra.mxu1 %vm262_vm0, %v41_v26  ;;  %1078 = vmatprep.mubr.msk.f32.mxu0 %vm68_vm1, %v57_v27  ;;  %v607_v61 = vld [vmem:[%s1628_s7 + $0x38] sm:$0xff]  ;;  %v606_v62 = vld [vmem:[%s1628_s7 + $0x30] sm:$0xff]  ;;  %v605_v63 = vld [vmem:[%s1628_s7 + $0x28] sm:$0xff] }
  0x16   :  { %1107 = vmatprep.mubr.msk.f32.mxu1 %vm262_vm0, %v42_v28  ;;  %514 = vperm.xlu1 %1211, %v464_v36   ;;  %v604_v0 = vld [vmem:[%s1628_s7 + $0x20] sm:$0xff]  ;;  %v603_v1 = vld [vmem:[%s1628_s7 + $0x18] sm:$0xff]  ;;  %v602_v2 = vld [vmem:[%s1628_s7 + $0x10] sm:$0xff] }
  0x17   :  { %v601_v3 = vld [vmem:[%s1628_s7 + $0x8] sm:$0xff]  ;;  %v600_v4 = vld [vmem:[%s1628_s7] sm:$0xff] }
  0x18   :  { %1079 = vmatmul.mubr.msk.f32.gmra.mxu0 %vm68_vm1, %v58_v31  ;;  %509 = vperm.xlu0 %1210, %v463_v41   ;;  %v858_v5 = vld [vmem:[%s1629_s8] sm:$0xff] }
  0x19   :  { %1108 = vmatmul.mubr.msk.f32.gmra.mxu1 %vm262_vm0, %v43_v32  ;;  %1081 = vmatprep.mubr.msk.f32.mxu0 %vm68_vm1, %v59_v33  ;;  %v584_v6 = vld [vmem:[%s1630_s4] sm:$0xff] }
  0x1a   :  { %1110 = vmatprep.mubr.msk.f32.mxu1 %vm262_vm0, %v44_v34  ;;  %504 = vperm.xlu1 %1211, %v462_v42  }
  0x1c   :  { %1082 = vmatmul.mubr.msk.f32.gmra.mxu0 %vm68_vm1, %v60_v37  ;;  %499 = vperm.xlu0 %1210, %v461_v46  }
  0x1d   :  { %1111 = vmatmul.mubr.msk.f32.gmra.mxu1 %vm262_vm0, %v45_v38  ;;  %1084 = vmatprep.mubr.msk.f32.mxu0 %vm68_vm1, %v61_v39 }
  0x1e   :  { %1113 = vmatprep.mubr.msk.f32.mxu1 %vm262_vm0, %v46_v40  ;;  %494 = vperm.xlu1 %1211, %v460_v47  }
  0x20   :  { %1085 = vmatmul.mubr.msk.f32.gmra.mxu0 %vm68_vm1, %v62_v43  ;;  %489 = vperm.xlu0 %1210, %v459_v49  }
  0x21   :  { %1114 = vmatmul.mubr.msk.f32.gmra.mxu1 %vm262_vm0, %v47_v44  ;;  %1087 = vmatprep.mubr.msk.f32.mxu0 %vm68_vm1, %v63_v45 }
  0x22   :  { %484 = vperm.xlu1 %1211, %v458_v50   ;;  %1148 = vmatprep.mubr.f32.mxu1 %v584_v6 }
  0x24   :  { %1088 = vmatmul.mubr.msk.f32.gmra.mxu0 %vm68_vm1, %v64_v48  ;;  %479 = vperm.xlu0 %1210, %v457_v51  }
  0x26   :  { %474 = vperm.xlu1 %1211, %v456_v52  }
  0x28   :  { %693 = vperm.xlu0 %1210, %v615_v53  }
  0x2a   :  { %688 = vperm.xlu1 %1211, %v614_v54  }
  0x2c   :  { %683 = vperm.xlu0 %1210, %v613_v55  }
  0x2e   :  { %678 = vperm.xlu1 %1211, %v612_v56  }
  0x30   :  { %673 = vperm.xlu0 %1210, %v611_v57  }
  0x32   :  { %668 = vperm.xlu1 %1211, %v610_v58  }
  0x34   :  { %663 = vperm.xlu0 %1210, %v609_v59  }
  0x36   :  { %658 = vperm.xlu1 %1211, %v608_v60  }
  0x38   :  { %653 = vperm.xlu0 %1210, %v607_v61  }
  0x3a   :  { %648 = vperm.xlu1 %1211, %v606_v62  }
  0x3c   :  { %643 = vperm.xlu0 %1210, %v605_v63  }
  0x3e   :  { %638 = vperm.xlu1 %1211, %v604_v0  }
  0x40   :  { %633 = vperm.xlu0 %1210, %v603_v1  }
  0x42   :  { %628 = vperm.xlu1 %1211, %v602_v2  }
  0x44   :  { %623 = vperm.xlu0 %1210, %v601_v3  }
  0x46   :  { %618 = vperm.xlu1 %1211, %v600_v4  }
  0x48   :  { %861 = vperm.xlu0 %1210, %v858_v5  }
  0x83   :  { %v550_v22 = vpop.permute.xlu0 %549 }
  0x85   :  { %v540_v26 = vpop.permute.xlu1 %539 }
  0x87   :  { %v545_v30 = vpop.permute.xlu0 %544 }
  0x89   :  { %v535_v34 = vpop.permute.xlu1 %534 }
  0x8b   :  { %v530_v38 = vpop.permute.xlu0 %529 }
  0x8d   :  { %v525_v41 = vpop.permute.xlu1 %524 }
  0x8f   :  { %v520_v50 = vpop.permute.xlu0 %519 }
  0x91   :  { %v515_v55 = vpop.permute.xlu1 %514 }
  0x93   :  { %v510_v62 = vpop.permute.xlu0 %509 }
  0x95   :  { %v505_v2 = vpop.permute.xlu1 %504 }
  0xc5   :  { %v1507_v7 = vpop.f32.mrf.mxu1 }
  0xc7   :  { %v1509_v8 = vpop.f32.mrf.mxu1 }
  0xc8   :  { %v1511_v9 = vpop.f32.mrf.mxu0 }
  0xc9   :  { %v1513_v10 = vpop.f32.mrf.mxu1 }
  0xca   :  { %v1515_v11 = vpop.f32.mrf.mxu0 }
  0xcb   :  { %v1517_v12 = vpop.f32.mrf.mxu1 }
  0xcc   :  { %v1519_v13 = vpop.f32.mrf.mxu0 }
  0xcd   :  { %v1521_v14 = vpop.f32.mrf.mxu1 }
  0xce   :  { %v1523_v15 = vpop.f32.mrf.mxu0 }
  0xcf   :  { %v1525_v16 = vpop.f32.mrf.mxu1 }
  0xd0   :  { %v1527_v17 = vpop.f32.mrf.mxu0 }
  0xd1   :  { %v1103_v18 = vpop.f32.mrf.mxu1 }
  0xd2   :  { %v1529_v19 = vpop.f32.mrf.mxu0 }
  0xd3   :  { %v407_v20 = vpop.f32.mrf.mxu1 }
  0xd4   :  { %v1077_v21 = vpop.f32.mrf.mxu0 }
  0xd5   :  { %v1106_v23 = vpop.f32.mrf.mxu1  ;;  %v413_v3 = vadd.f32 %v1103_v18, %v1077_v21  ;;  %v398_v18 = vadd.f32 %v1525_v16, %v1529_v19  ;;  %v383_v16 = vadd.f32 %v1507_v7, %v1511_v9 }
  0xd6   :  { %v213_v24 = vpop.f32.mrf.mxu0 }
  0xd7   :  { %v417_v25 = vpop.f32.mrf.mxu1  ;;  %v408_v6 = vadd.f32 %v407_v20, %v213_v24  ;;  %v393_v20 = vadd.f32 %v1513_v10, %v1519_v13  ;;  %v378_v10 = vadd.f32 %v1509_v8, %v1515_v11  ;;  %v585_v8 = vld [vmem:[%s1630_s4 + $0x8] sm:$0xff]  ;;  %v586_v11 = vld [vmem:[%s1630_s4 + $0x10] sm:$0xff] }
  0xd8   :  { %v1080_v27 = vpop.f32.mrf.mxu0 }
  0xd9   :  { %v1109_v28 = vpop.f32.mrf.mxu1  ;;  %v423_v59 = vadd.f32 %v1106_v23, %v1080_v27  ;;  %v500_v23 = vpop.permute.xlu0 %499  ;;  %v403_v27 = vadd.f32 %v1521_v14, %v1527_v17  ;;  %v558_v21 = vadd.f32 %v505_v2, %v408_v6  ;;  %v388_v14 = vadd.f32 %v1517_v12, %v1523_v15 }
  0xda   :  { %v223_v29 = vpop.f32.mrf.mxu0 }
  0xdb   :  { %v427_v31 = vpop.f32.mrf.mxu1  ;;  %v418_v63 = vadd.f32 %v417_v25, %v223_v29  ;;  %v561_v4 = vadd.f32 %v520_v50, %v423_v59  ;;  %v559_v25 = vadd.f32 %v510_v62, %v413_v3  ;;  %v495_v29 = vpop.permute.xlu1 %494  ;;  %v557_v24 = vadd.f32 %v500_v23, %v403_v27  ;;  %v596_v50 = vld [vmem:[%s1630_s4 + $0x60] sm:$0xff] }
  0xdc   :  { %v1083_v32 = vpop.f32.mrf.mxu0  ;;  %v556_v17 = vadd.f32 %v495_v29, %v398_v18 }
  0xdd   :  { %v1112_v33 = vpop.f32.mrf.mxu1  ;;  %v433_v51 = vadd.f32 %v1109_v28, %v1083_v32  ;;  %v577_v28 = vmax.f32 %v561_v4, 0.0  ;;  %v490_v32 = vpop.permute.xlu0 %489 }
  0xde   :  { %v233_v35 = vpop.f32.mrf.mxu0  ;;  %v555_v19 = vadd.f32 %v490_v32, %v393_v20 }
  0xdf   :  { %v437_v36 = vpop.f32.mrf.mxu1  ;;  %v428_v56 = vadd.f32 %v427_v31, %v233_v35  ;;  %v563_v60 = vadd.f32 %v530_v38, %v433_v51  ;;  %v575_v31 = vmax.f32 %v559_v25, 0.0  ;;  %v573_v35 = vmax.f32 %v557_v24, 0.0  ;;  %v597_v51 = vld [vmem:[%s1630_s4 + $0x68] sm:$0xff] }
  0xe0   :  { %v1086_v37 = vpop.f32.mrf.mxu0  ;;  %v571_v15 = vmax.f32 %v555_v19, 0.0 }
  0xe1   :  { %v1115_v40 = vpop.f32.mrf.mxu1  ;;  %v443_v43 = vadd.f32 %v1112_v33, %v1086_v37  ;;  %v562_v0 = vadd.f32 %v525_v41, %v428_v56  ;;  %v579_v5 = vmax.f32 %v563_v60, 0.0  ;;  %v574_v33 = vmax.f32 %v558_v21, 0.0  ;;  %v480_v37 = vpop.permute.xlu0 %479  ;;  %v587_v41 = vld [vmem:[%s1630_s4 + $0x18] sm:$0xff] }
  0xe2   :  { %v243_v39 = vpop.f32.mrf.mxu0  ;;  %v553_v12 = vadd.f32 %v480_v37, %v383_v16 }
  0xe3   :  { %v447_v45 = vpop.f32.mrf.mxu1  ;;  %v438_v47 = vadd.f32 %v437_v36, %v243_v39  ;;  %v565_v52 = vadd.f32 %v540_v26, %v443_v43  ;;  %v578_v26 = vmax.f32 %v562_v0, 0.0  ;;  %v572_v36 = vmax.f32 %v556_v17, 0.0  ;;  %v589_v43 = vld [vmem:[%s1630_s4 + $0x28] sm:$0xff] }
  0xe4   :  { %v1089_v42 = vpop.f32.mrf.mxu0  ;;  %v569_v7 = vmax.f32 %v553_v12, 0.0 }
  0xe5   :  { %v453_v44 = vadd.f32 %v1115_v40, %v1089_v42  ;;  %v564_v57 = vadd.f32 %v535_v34, %v438_v47  ;;  %v581_v61 = vmax.f32 %v565_v52, 0.0  ;;  %v485_v34 = vpop.permute.xlu1 %484  ;;  %v588_v42 = vld [vmem:[%s1630_s4 + $0x20] sm:$0xff]  ;;  %v593_v47 = vld [vmem:[%s1630_s4 + $0x48] sm:$0xff]  ;;  %v598_v52 = vld [vmem:[%s1630_s4 + $0x70] sm:$0xff] }
  0xe6   :  { %v253_v46 = vpop.f32.mrf.mxu0  ;;  %v554_v13 = vadd.f32 %v485_v34, %v388_v14 }
  0xe7   :  { %v567_v48 = vadd.f32 %v550_v22, %v453_v44  ;;  %v448_v49 = vadd.f32 %v447_v45, %v253_v46  ;;  %v580_v1 = vmax.f32 %v564_v57, 0.0  ;;  %v560_v22 = vadd.f32 %v515_v55, %v418_v63  ;;  %v590_v44 = vld [vmem:[%s1630_s4 + $0x30] sm:$0xff]  ;;  %v591_v45 = vld [vmem:[%s1630_s4 + $0x38] sm:$0xff]  ;;  %v592_v46 = vld [vmem:[%s1630_s4 + $0x40] sm:$0xff] }
  0xe8   :  { %v570_v40 = vmax.f32 %v554_v13, 0.0 }
  0xe9   :  { %v583_v53 = vmax.f32 %v567_v48, 0.0  ;;  %v566_v54 = vadd.f32 %v545_v30, %v448_v49  ;;  %v576_v30 = vmax.f32 %v560_v22, 0.0  ;;  %v475_v38 = vpop.permute.xlu1 %474  ;;  %v594_v48 = vld [vmem:[%s1630_s4 + $0x50] sm:$0xff]  ;;  %v595_v49 = vld [vmem:[%s1630_s4 + $0x58] sm:$0xff] }
  0xea   :  { %v552_v39 = vadd.f32 %v475_v38, %v378_v10 }
  0xeb   :  { %v582_v58 = vmax.f32 %v566_v54, 0.0  ;;  %1116 = vmatprep.subr.mxu1 %v583_v53  ;;  %v1213_v54 = vmov 0.0  }
  0xec   :  { %1117 = vmatpush3.msra.mxu1 %v583_v53  ;;  %v568_v9 = vmax.f32 %v552_v39, 0.0  ;;  %v599_v53 = vld [vmem:[%s1630_s4 + $0x78] sm:$0xff]  ;;  %1172 = vmatprep.subr.mxu0 %v1213_v54 }
  0xed   :  { %1118 = vmatprep.subr.mxu1 %v582_v58  ;;  %1204 = vmatprep.mubr.msk.f32.mxu0 %vm1214_vm2, %v1213_v54  ;;  %v689_v63 = vpop.permute.xlu1 %688 }
  0xee   :  { %1119 = vmatpush3.msra.mxu1 %v582_v58 }
  0xef   :  { %1120 = vmatprep.subr.mxu1 %v581_v61 }
  0xf0   :  { %1121 = vmatpush3.msra.mxu1 %v581_v61  ;;  %v694_v61 = vpop.permute.xlu0 %693 }
  0xf1   :  { %1122 = vmatprep.subr.mxu1 %v580_v1  ;;  %v679_v4 = vpop.permute.xlu1 %678 }
  0xf2   :  { %1123 = vmatpush3.msra.mxu1 %v580_v1 }
  0xf3   :  { %1124 = vmatprep.subr.mxu1 %v579_v5 }
  0xf4   :  { %1125 = vmatpush3.msra.mxu1 %v579_v5  ;;  %v684_v2 = vpop.permute.xlu0 %683 }
  0xf5   :  { %1126 = vmatprep.subr.mxu1 %v578_v26  ;;  %v669_v23 = vpop.permute.xlu1 %668 }
  0xf6   :  { %1127 = vmatpush3.msra.mxu1 %v578_v26 }
  0xf7   :  { %1128 = vmatprep.subr.mxu1 %v577_v28 }
  0xf8   :  { %1129 = vmatpush3.msra.mxu1 %v577_v28  ;;  %v674_v22 = vpop.permute.xlu0 %673 }
  0xf9   :  { %1130 = vmatprep.subr.mxu1 %v576_v30  ;;  %v659_v24 = vpop.permute.xlu1 %658 }
  0xfa   :  { %1131 = vmatpush3.msra.mxu1 %v576_v30 }
  0xfb   :  { %1132 = vmatprep.subr.mxu1 %v575_v31 }
  0xfc   :  { %1133 = vmatpush3.msra.mxu1 %v575_v31  ;;  %v664_v29 = vpop.permute.xlu0 %663 }
  0xfd   :  { %1134 = vmatprep.subr.mxu1 %v574_v33  ;;  %v649_v19 = vpop.permute.xlu1 %648 }
  0xfe   :  { %1135 = vmatpush3.msra.mxu1 %v574_v33 }
  0xff   :  { %1136 = vmatprep.subr.mxu1 %v573_v35 }
 0x100   :  { %1137 = vmatpush3.msra.mxu1 %v573_v35  ;;  %v654_v33 = vpop.permute.xlu0 %653 }
 0x101   :  { %1138 = vmatprep.subr.mxu1 %v572_v36  ;;  %v639_v38 = vpop.permute.xlu1 %638 }
 0x102   :  { %1139 = vmatpush3.msra.mxu1 %v572_v36 }
 0x103   :  { %1140 = vmatprep.subr.mxu1 %v571_v15 }
 0x104   :  { %1141 = vmatpush3.msra.mxu1 %v571_v15  ;;  %v644_v37 = vpop.permute.xlu0 %643 }
 0x105   :  { %1142 = vmatprep.subr.mxu1 %v570_v40 }
 0x106   :  { %1143 = vmatpush3.msra.mxu1 %v570_v40 }
 0x107   :  { %1144 = vmatprep.subr.mxu1 %v569_v7 }
 0x108   :  { %1145 = vmatpush3.msra.mxu1 %v569_v7 }
 0x109   :  { %1146 = vmatprep.subr.mxu1 %v568_v9 }
 0x10a   :  { %1147 = vmatpush3.msra.mxu1 %v568_v9 }
 0x10b   :  { %1149 = vmatmul.mubr.f32.vlgmr.msra.gmra.mxu1 %v585_v8  ;;  %v634_v8 = vpop.permute.xlu0 %633 }
 0x10c   :  { %1151 = vmatprep.mubr.f32.mxu1 %v586_v11 }
 0x10f   :  { %1152 = vmatmul.mubr.f32.gmra.mxu1 %v587_v41 }
 0x110   :  { %1154 = vmatprep.mubr.f32.mxu1 %v588_v42  ;;  %v629_v42 = vpop.permute.xlu1 %628 }
 0x113   :  { %1155 = vmatmul.mubr.f32.gmra.mxu1 %v589_v43 }
 0x114   :  { %1157 = vmatprep.mubr.f32.mxu1 %v590_v44 }
 0x117   :  { %1158 = vmatmul.mubr.f32.gmra.mxu1 %v591_v45 }
 0x118   :  { %1160 = vmatprep.mubr.f32.mxu1 %v592_v46 }
 0x11b   :  { %1161 = vmatmul.mubr.f32.gmra.mxu1 %v593_v47  ;;  %v624_v47 = vpop.permute.xlu0 %623 }
 0x11c   :  { %1163 = vmatprep.mubr.f32.mxu1 %v594_v48 }
 0x11f   :  { %1164 = vmatmul.mubr.f32.gmra.mxu1 %v595_v49 }
 0x120   :  { %1166 = vmatprep.mubr.f32.mxu1 %v596_v50  ;;  %v619_v50 = vpop.permute.xlu1 %618 }
 0x123   :  { %1167 = vmatmul.mubr.f32.gmra.mxu1 %v597_v51 }
 0x124   :  { %1169 = vmatprep.mubr.f32.mxu1 %v598_v52 }
 0x127   :  { %1170 = vmatmul.mubr.f32.gmra.mxu1 %v599_v53 }
 0x1cb   :  { %v1590_v55 = vpop.f32.mrf.mxu1 }
 0x1cc   :  { %v768_v48 = vadd.f32 %v1590_v55, %v624_v47  ;;  %v857_v55 = vld [vmem:[%s1631_s5] sm:$0xff] }
 0x1cd   :  { %v1592_v56 = vpop.f32.mrf.mxu1 }
 0x1ce   :  { %v763_v51 = vadd.f32 %v1592_v56, %v619_v50  ;;  %v842_v53 = vmax.f32 %v768_v48, 0.0 }
 0x1cf   :  { %v1594_v57 = vpop.f32.mrf.mxu1 }
 0x1d0   :  { %v778_v43 = vadd.f32 %v1594_v57, %v634_v8  ;;  %v841_v57 = vmax.f32 %v763_v51, 0.0 }
 0x1d1   :  { %v1596_v58 = vpop.f32.mrf.mxu1 }
 0x1d2   :  { %v773_v45 = vadd.f32 %v1596_v58, %v629_v42  ;;  %v844_v49 = vmax.f32 %v778_v43, 0.0  ;;  %v862_v58 = vpop.permute.xlu0 %861 }
 0x1d3   :  { %v1156_v59 = vpop.f32.mrf.mxu1 }
 0x1d4   :  { %v788_v7 = vadd.f32 %v1156_v59, %v644_v37  ;;  %v843_v52 = vmax.f32 %v773_v45, 0.0 }
 0x1d5   :  { %v782_v60 = vpop.f32.mrf.mxu1 }
 0x1d6   :  { %v783_v11 = vadd.f32 %v782_v60, %v639_v38  ;;  %v846_v44 = vmax.f32 %v788_v7, 0.0 }
 0x1d7   :  { %v1159_v62 = vpop.f32.mrf.mxu1 }
 0x1d8   :  { %v798_v12 = vadd.f32 %v1159_v62, %v654_v33  ;;  %v845_v46 = vmax.f32 %v783_v11, 0.0 }
 0x1d9   :  { %v792_v0 = vpop.f32.mrf.mxu1 }
 0x1da   :  { %v793_v39 = vadd.f32 %v792_v0, %v649_v19  ;;  %v848_v9 = vmax.f32 %v798_v12, 0.0 }
 0x1db   :  { %v1162_v1 = vpop.f32.mrf.mxu1 }
 0x1dc   :  { %v808_v35 = vadd.f32 %v1162_v1, %v664_v29  ;;  %v847_v41 = vmax.f32 %v793_v39, 0.0 }
 0x1dd   :  { %v802_v3 = vpop.f32.mrf.mxu1 }
 0x1de   :  { %v803_v13 = vadd.f32 %v802_v3, %v659_v24  ;;  %v850_v15 = vmax.f32 %v808_v35, 0.0 }
 0x1df   :  { %v1165_v5 = vpop.f32.mrf.mxu1 }
 0x1e0   :  { %v818_v14 = vadd.f32 %v1165_v5, %v674_v22  ;;  %v849_v40 = vmax.f32 %v803_v13, 0.0 }
 0x1e1   :  { %v812_v6 = vpop.f32.mrf.mxu1 }
 0x1e2   :  { %v813_v34 = vadd.f32 %v812_v6, %v669_v23  ;;  %v852_v10 = vmax.f32 %v818_v14, 0.0 }
 0x1e3   :  { %v1168_v26 = vpop.f32.mrf.mxu1 }
 0x1e4   :  { %v828_v21 = vadd.f32 %v1168_v26, %v684_v2  ;;  %v851_v36 = vmax.f32 %v813_v34, 0.0 }
 0x1e5   :  { %v822_v27 = vpop.f32.mrf.mxu1 }
 0x1e6   :  { %v823_v31 = vadd.f32 %v822_v27, %v679_v4  ;;  %v854_v17 = vmax.f32 %v828_v21, 0.0 }
 0x1e7   :  { %v1171_v25 = vpop.f32.mrf.mxu1 }
 0x1e8   :  { %v838_v28 = vadd.f32 %v1171_v25, %v694_v61  ;;  %v853_v16 = vmax.f32 %v823_v31, 0.0 }
 0x1e9   :  { %v832_v18 = vpop.f32.mrf.mxu1 }
 0x1ea   :  { %v856_v30 = vmax.f32 %v838_v28, 0.0  ;;  %v833_v20 = vadd.f32 %v832_v18, %v689_v63 }
 0x1ec   :  { %v855_v32 = vmax.f32 %v833_v20, 0.0  ;;  %1173 = vmatpush3.msra.mxu0 %v856_v30 }
 0x1ed   :  { %1174 = vmatprep.subr.mxu0 %v1213_v54 }
 0x1ee   :  { %1175 = vmatpush3.msra.mxu0 %v855_v32 }
 0x1ef   :  { %1176 = vmatprep.subr.mxu0 %v1213_v54 }
 0x1f0   :  { %1177 = vmatpush3.msra.mxu0 %v854_v17 }
 0x1f1   :  { %1178 = vmatprep.subr.mxu0 %v1213_v54 }
 0x1f2   :  { %1179 = vmatpush3.msra.mxu0 %v853_v16 }
 0x1f3   :  { %1180 = vmatprep.subr.mxu0 %v1213_v54 }
 0x1f4   :  { %1181 = vmatpush3.msra.mxu0 %v852_v10 }
 0x1f5   :  { %1182 = vmatprep.subr.mxu0 %v1213_v54 }
 0x1f6   :  { %1183 = vmatpush3.msra.mxu0 %v851_v36 }
 0x1f7   :  { %1184 = vmatprep.subr.mxu0 %v1213_v54 }
 0x1f8   :  { %1185 = vmatpush3.msra.mxu0 %v850_v15 }
 0x1f9   :  { %1186 = vmatprep.subr.mxu0 %v1213_v54 }
 0x1fa   :  { %1187 = vmatpush3.msra.mxu0 %v849_v40 }
 0x1fb   :  { %1188 = vmatprep.subr.mxu0 %v1213_v54 }
 0x1fc   :  { %1189 = vmatpush3.msra.mxu0 %v848_v9 }
 0x1fd   :  { %1190 = vmatprep.subr.mxu0 %v1213_v54 }
 0x1fe   :  { %1191 = vmatpush3.msra.mxu0 %v847_v41 }
 0x1ff   :  { %1192 = vmatprep.subr.mxu0 %v1213_v54 }
 0x200   :  { %1193 = vmatpush3.msra.mxu0 %v846_v44 }
 0x201   :  { %1194 = vmatprep.subr.mxu0 %v1213_v54 }
 0x202   :  { %1195 = vmatpush3.msra.mxu0 %v845_v46 }
 0x203   :  { %1196 = vmatprep.subr.mxu0 %v1213_v54 }
 0x204   :  { %1197 = vmatpush3.msra.mxu0 %v844_v49 }
 0x205   :  { %1198 = vmatprep.subr.mxu0 %v1213_v54 }
 0x206   :  { %1199 = vmatpush3.msra.mxu0 %v843_v52 }
 0x207   :  { %1200 = vmatprep.subr.mxu0 %v1213_v54 }
 0x208   :  { %1201 = vmatpush3.msra.mxu0 %v842_v53 }
 0x209   :  { %1202 = vmatprep.subr.mxu0 %v1213_v54 }
 0x20a   :  { %1203 = vmatpush3.msra.mxu0 %v841_v57 }
 0x20b   :  { %1205 = vmatmul.mubr.f32.vlgmr.msra.gmra.mxu0 %v857_v55 }
 0x2cb   :  { %v930_v56 = vpop.f32.mrf.mxu0 }
 0x2cc   :  { %v931_v59 = vadd.f32 %v930_v56, %v862_v58 }
 0x2cd   :  { %v1206_v60 = vpop.f32.mrf.mxu0 }
 0x2ce   :  { %v935_v61 = vrot.slane %v931_v59, 1 }
 0x2d0   :  { %v937_v62 = vmin.f32 %v931_v59, %v935_v61 }
 0x2d2   :  { %938 = vst [vmem:[%s1632_s9] sm:$0x1] %v937_v62 }

</bundles_post_ra>
